<compile_context>
chip_gen: v7x
topology: tpu7x:2x2x1
jax: 0.10.0
libtpu: 0.0.40
codegen_flags: <defaults>
</compile_context>

<pallas_src>
import math
import functools

import numpy as np
import jax
import jax.numpy as jnp
from jax.experimental import pallas as pl
from jax.experimental.pallas import tpu as pltpu


def _round_up(x, m):
    return ((x + m - 1) // m) * m


def _cdiv(a, b):
    return -(-a // b)


# ----------------------------------------------------------------------------
# divmod by a compile-time constant, strength-reduced for the VPU.
# ----------------------------------------------------------------------------
def _make_divmod(d, vmax):
    """Return fn(v) -> (v // d, v % d), exact for 0 <= v <= vmax, cheap on VPU."""
    d = int(d)
    vmax = int(vmax)
    if d == 1:
        return lambda v: (v, jnp.zeros_like(v))
    if (d & (d - 1)) == 0:                       # power of two -> shift / mask
        sh = d.bit_length() - 1
        mask = d - 1
        return lambda v: (v >> sh, v & mask)
    # 16-bit fixed-point reciprocal: q = (v * M) >> 16 (1 vmul + 1 shift).
    # Verified exact over the whole coordinate domain at trace time.
    M = int(math.ceil(65536 / d))
    exact = False
    if vmax * M < 2 ** 31 and vmax <= (1 << 20):
        vv = np.arange(vmax + 1, dtype=np.int64)
        exact = bool(np.all((vv * M) >> 16 == vv // d))
    if exact:
        def dm_fast(v, M=M, d=d):
            q = (v * M) >> 16
            return q, v - q * d
        return dm_fast

    def dm_slow(v, d=d):                         # generic fallback
        q = v // d
        return q, v - q * d
    return dm_slow


# ----------------------------------------------------------------------------
# Pallas kernel: 4 window-curve codes per voxel, fully elementwise on the VPU.
# ----------------------------------------------------------------------------
def _vcode_kernel(in_ref, out_ref, *, wn2, wm2, n1, m1, sn, sm, xdiv, ydiv):
    b = in_ref[0]
    yc = in_ref[1]
    xc = in_ref[2]

    batch_off = b * (sn * sm * 10)

    N2, M2, N1, M1 = 2 * wn2, 2 * wm2, 2 * n1, 2 * m1
    n2m2 = N2 * M2

    def signed(v, m):
        # (-1)**k * v with m = -(k & 1) in {0, -1}: XOR + SUB, no 32-bit vmul
        return (v ^ m) - m

    def codes(xs, ys):
        x1, x2 = xdiv(xs)
        y1, y2 = ydiv(ys)
        my1 = -(y1 & 1)
        mx1 = -(x1 & 1)
        mx2 = -(x2 & 1)
        my2 = -(y2 & 1)
        vx = (N1 * y1 + signed(x1, my1)) * n2m2 + \
            signed(M2 * x2 + signed(y2, mx2), my1)
        vy = (M1 * x1 + signed(y1, mx1)) * n2m2 + \
            signed(N2 * y2 + signed(x2, my2), mx1)
        return vx + batch_off, vy + batch_off

    vx, vy = codes(xc, yc)                             # shifted = False
    vxs, vys = codes(xc + wn2 // 2, yc + wm2 // 2)     # shifted = True

    out_ref[0] = vx
    out_ref[1] = vy
    out_ref[2] = vxs
    out_ref[3] = vys


def _compute_vcodes(coords, window_shape, sparse_shape):
    """Pallas kernel over all N voxels; returns an int32 (4, N) code matrix."""
    N = coords.shape[0]
    LANE = 1024                  # lane-dense last dim (unmasked full-width vst)
    MAX_BLOCK_ROWS = 256         # 1 MiB / input stream / step; ~14 MiB pipelined

    if coords.dtype != jnp.int32:
        coords = coords.astype(jnp.int32)

    W = _round_up(max(N, 1), LANE)           # pad <= 1023 elements total
    rows = W // LANE
    pad = W - N

    # single fused XLA pass: column gather + pad + reshape (3, rows, LANE).
    # TODO(synk): if the caller can cache coords in SoA (4, N) int32 layout,
    # this remaining extra HBM pass (read 16N B / write 12N B) disappears too.
    cols = jnp.stack([coords[:, 0], coords[:, 2], coords[:, 3]], axis=0)
    stacked = jnp.pad(cols, ((0, 0), (0, pad))).reshape(3, rows, LANE)

    if rows <= 8:
        block_rows = rows                                  # block == full dim
    else:
        steps = max(2, _cdiv(rows, MAX_BLOCK_ROWS))        # >=2: v7x 2-TC split
        if steps % 2:
            steps += 1                                     # even steps: balance
        block_rows = min(MAX_BLOCK_ROWS, _round_up(_cdiv(rows, steps), 8))
    grid = _cdiv(rows, block_rows)       # partial last block clipped by Pallas

    wn2, wm2 = int(window_shape[0]), int(window_shape[1])
    sn, sm = int(sparse_shape[0]), int(sparse_shape[1])
    n1 = int(math.ceil(sn / wn2) + 1)
    m1 = int(math.ceil(sm / wm2) + 1)

    xdiv = _make_divmod(wn2, sn - 1 + wn2 // 2)
    ydiv = _make_divmod(wm2, sm - 1 + wm2 // 2)

    kernel = functools.partial(_vcode_kernel, wn2=wn2, wm2=wm2, n1=n1, m1=m1,
                               sn=sn, sm=sm, xdiv=xdiv, ydiv=ydiv)

    # TODO(synk): codes are int32 (PyTorch uses int64); a loud bound check in
    # FlattenedWindowMapping rejects configs that would overflow.
    out = pl.pallas_call(
        kernel,
        out_shape=jax.ShapeDtypeStruct((4, rows, LANE), jnp.int32),
        grid_spec=pltpu.PrefetchScalarGridSpec(
            num_scalar_prefetch=0,
            grid=(grid,),
            in_specs=[pl.BlockSpec((3, block_rows, LANE), lambda i: (0, i, 0))],
            out_specs=pl.BlockSpec((4, block_rows, LANE), lambda i: (0, i, 0)),
        ),
        compiler_params=pltpu.CompilerParams(
            dimension_semantics=("parallel",),
            vmem_limit_bytes=32 << 20),
    )(stacked)

    return out.reshape(4, -1)[:, :N]


# ----------------------------------------------------------------------------
# Exact (sequential) host builder for flat2win -- mirrors the PyTorch loop.
# Only used as a fallback when some padded batch has < group_size voxels.
# ----------------------------------------------------------------------------
def _flat2win_host(counts, group_size):
    counts = np.asarray(counts, dtype=np.int64)
    counts_p = ((counts + group_size - 1) // group_size) * group_size
    bsi = np.concatenate([[0], np.cumsum(counts)])
    bsi_p = np.concatenate([[0], np.cumsum(counts_p)])
    flat2win = np.arange(bsi_p[-1], dtype=np.int64)
    for i in range(len(counts)):
        if counts[i] != counts_p[i]:
            rem = counts[i] % group_size
            flat2win[bsi_p[i + 1] - group_size + rem: bsi_p[i + 1]] = \
                flat2win[bsi_p[i + 1] - 2 * group_size + rem:
                         bsi_p[i + 1] - group_size]
        flat2win[bsi_p[i]:bsi_p[i + 1]] -= bsi_p[i] - bsi[i]
    return flat2win


# ----------------------------------------------------------------------------
# Module wrapper (config only, no learnable parameters).
# ----------------------------------------------------------------------------
class FlattenedWindowMapping:
    def __init__(self, window_shape, sparse_shape, group_size):
        self.window_shape = window_shape
        self.sparse_shape = sparse_shape
        self.group_size = group_size

    def _check_int32_codes(self, batch_size):
        wn2, wm2 = int(self.window_shape[0]), int(self.window_shape[1])
        sn, sm = int(self.sparse_shape[0]), int(self.sparse_shape[1])
        n1 = math.ceil(sn / wn2) + 1
        m1 = math.ceil(sm / wm2) + 1
        curve = (2 * n1 * m1 + max(n1, m1)) * (4 * wn2 * wm2) \
            + 2 * wn2 * wm2 + max(wn2, wm2)
        bound = curve + max(int(batch_size) - 1, 0) * sn * sm * 10
        if bound >= 2 ** 31:
            raise NotImplementedError(
                "window codes would overflow int32 for this config "
                "(PyTorch reference uses int64)")

    def __call__(self, coords, batch_size):
        coords = jnp.asarray(coords, dtype=jnp.int32)
        N = coords.shape[0]
        G = int(self.group_size)
        self._check_int32_codes(batch_size)
        bcol = coords[:, 0]

        # ---- per-batch counts / offsets (tiny, dispatched first) ----------
        # assumes coords are grouped contiguously by batch index (same
        # assumption as the original usage).
        counts = jnp.bincount(bcol, length=batch_size).astype(jnp.int32)
        counts_p = ((counts + G - 1) // G) * G
        zero = jnp.zeros((1,), jnp.int32)
        bsi = jnp.concatenate([zero, jnp.cumsum(counts)]).astype(jnp.int32)
        bsi_p = jnp.concatenate([zero, jnp.cumsum(counts_p)]).astype(jnp.int32)
        offsets = bsi_p[:-1] - bsi[:-1]                      # per-batch shift
        win2flat = jnp.arange(N, dtype=jnp.int32) + offsets[bcol]

        # ---- heavy device work: Pallas v-codes + ONE batched argsort ------
        codes = _compute_vcodes(coords, self.window_shape, self.sparse_shape)
        # TODO(synk): the batched XLA stable sort, not the Pallas kernel, is
        # the end-to-end bottleneck for large N (no clean Pallas sort on TPU).
        order = jnp.argsort(codes, axis=-1, stable=True).astype(jnp.int32)

        # ---- one tiny host sync (batch_size ints) for flat2win's length ---
        counts_host = np.asarray(jax.device_get(counts), dtype=np.int64)
        counts_p_host = ((counts_host + G - 1) // G) * G
        total_p = int(counts_p_host.sum())

        fast_ok = bool(np.all((counts_host % G == 0) | (counts_host >= G)))
        if fast_ok:
            # vectorized, on device (exact whenever every padded batch has at
            # least group_size voxels -- always true in practice)
            j = jnp.arange(total_p, dtype=jnp.int32)
            bj = jnp.searchsorted(bsi_p[1:], j, side='right').astype(jnp.int32)
            rem_j = (counts % G)[bj]
            seg_end = bsi_p[bj + 1]
            wrap = (rem_j != 0) & (j >= seg_end - G + rem_j)
            base = j - jnp.where(wrap, G, 0).astype(jnp.int32)
            flat2win = base - offsets[bj]
        else:
            # degenerate batches (< group_size voxels): byte-exact host loop
            flat2win = jnp.asarray(_flat2win_host(counts_host, G),
                                   dtype=jnp.int32)

        return {
            "flat2win": flat2win,
            "win2flat": win2flat,
            "x": order[0],
            "y": order[1],
            "x_shift": order[2],
            "y_shift": order[3],
        }


# ----------------------------------------------------------------------------
# Pure-numpy references (to sanity check kernel + mapping output).
# ----------------------------------------------------------------------------
def _vcodes_ref(coords_np, window_shape, sparse_shape, shifted):
    wn2, wm2 = window_shape[0], window_shape[1]
    sn, sm = sparse_shape[0], sparse_shape[1]
    n1 = int(math.ceil(sn / wn2) + 1)
    m1 = int(math.ceil(sm / wm2) + 1)
    N2, M2, N1, M1 = 2 * wn2, 2 * wm2, 2 * n1, 2 * m1
    if shifted:
        xs = coords_np[:, 3] + wn2 // 2
        ys = coords_np[:, 2] + wm2 // 2
    else:
        xs = coords_np[:, 3]
        ys = coords_np[:, 2]
    x1, y1 = xs // wn2, ys // wm2
    x2, y2 = xs % wn2, ys % wm2
    vx = (N1 * y1 + (-1) ** y1 * x1) * N2 * M2 + (-1) ** y1 * (M2 * x2 + (-1) ** x2 * y2)
    vy = (M1 * x1 + (-1) ** x1 * y1) * M2 * N2 + (-1) ** x1 * (N2 * y2 + (-1) ** y2 * x2)
    off = coords_np[:, 0] * sn * sm * 10
    return vx + off, vy + off


def _mapping_ref_np(coords_np, batch_size, window_shape, sparse_shape, group_size):
    coords_np = coords_np.astype(np.int64)
    counts = np.bincount(coords_np[:, 0], minlength=batch_size).astype(np.int64)
    bsi = np.concatenate([[0], np.cumsum(counts)])
    counts_p = ((counts + group_size - 1) // group_size) * group_size
    bsi_p = np.concatenate([[0], np.cumsum(counts_p)])
    flat2win = np.arange(bsi_p[-1], dtype=np.int64)
    win2flat = np.arange(bsi[-1], dtype=np.int64)
    for i in range(batch_size):
        win2flat[bsi[i]:bsi[i + 1]] += bsi_p[i] - bsi[i]
        if counts[i] != counts_p[i]:
            rem = counts[i] % group_size
            flat2win[bsi_p[i + 1] - group_size + rem: bsi_p[i + 1]] = \
                flat2win[bsi_p[i + 1] - 2 * group_size + rem:
                         bsi_p[i + 1] - group_size]
        flat2win[bsi_p[i]:bsi_p[i + 1]] -= bsi_p[i] - bsi[i]
    out = {"flat2win": flat2win, "win2flat": win2flat}
    vx, vy = _vcodes_ref(coords_np, window_shape, sparse_shape, shifted=False)
    vxs, vys = _vcodes_ref(coords_np, window_shape, sparse_shape, shifted=True)
    out["x"] = np.argsort(vx, kind="stable")
    out["y"] = np.argsort(vy, kind="stable")
    out["x_shift"] = np.argsort(vxs, kind="stable")
    out["y_shift"] = np.argsort(vys, kind="stable")
    return out


def _make_coords(key, per_batch, sparse_shape):
    blocks = []
    for bidx, c in enumerate(per_batch):
        key, k1, k2 = jax.random.split(key, 3)
        ys = jax.random.randint(k1, (c,), 0, sparse_shape[1], dtype=jnp.int32)
        xs = jax.random.randint(k2, (c,), 0, sparse_shape[0], dtype=jnp.int32)
        bcolv = jnp.full((c,), bidx, dtype=jnp.int32)
        zcol = jnp.zeros((c,), dtype=jnp.int32)
        blocks.append(jnp.stack([bcolv, zcol, ys, xs], axis=1))
    return key, jnp.concatenate(blocks, axis=0)


if __name__ == "__main__":
    key = jax.random.PRNGKey(0)

    batch_size = 2
    sparse_shape = (16, 16, 1)      # (n, m, _)
    window_shape = (4, 4, 1)        # (n2, m2, _)  -- power-of-two window
    group_size = 8

    # points per batch (13 and 19 exercise the padding branch of flat2win)
    key, coords = _make_coords(key, [13, 19], sparse_shape)      # (32, 4)

    mapping = FlattenedWindowMapping(window_shape, sparse_shape, group_size)
    out = mapping(coords, batch_size)
    jax.block_until_ready(out)

    # ---- check full mapping vs numpy reference (fast path) ----------------
    ref = _mapping_ref_np(np.asarray(coords), batch_size,
                          window_shape, sparse_shape, group_size)
    for k in ("flat2win", "win2flat", "x", "y", "x_shift", "y_shift"):
        assert np.array_equal(np.asarray(out[k]), ref[k]), k
    assert set(out) == {"flat2win", "win2flat", "x", "y", "x_shift", "y_shift"}
    assert out["win2flat"].shape == (coords.shape[0],)
    assert out["x"].shape == (coords.shape[0],)

    # ---- degenerate case: second batch smaller than group_size ------------
    key, coords_d = _make_coords(key, [19, 5], sparse_shape)
    out_d = mapping(coords_d, batch_size)
    jax.block_until_ready(out_d)
    ref_d = _mapping_ref_np(np.asarray(coords_d), batch_size,
                            window_shape, sparse_shape, group_size)
    for k in ("flat2win", "win2flat", "x", "y", "x_shift", "y_shift"):
        assert np.array_equal(np.asarray(out_d[k]), ref_d[k]), k

    # ---- kernel v-codes vs numpy reference (pow2 and non-pow2 windows) ----
    for ws, ss in [((4, 4, 1), (16, 16, 1)), ((3, 3, 1), (16, 16, 1))]:
        codes_k = np.asarray(_compute_vcodes(coords, ws, ss))
        cnp = np.asarray(coords).astype(np.int64)
        vx_r, vy_r = _vcodes_ref(cnp, ws, ss, shifted=False)
        vxs_r, vys_r = _vcodes_ref(cnp, ws, ss, shifted=True)
        assert np.array_equal(codes_k[0], vx_r)
        assert np.array_equal(codes_k[1], vy_r)
        assert np.array_equal(codes_k[2], vxs_r)
        assert np.array_equal(codes_k[3], vys_r)

    # ---- larger case: FlatFormer default config, multi-step grid with a ---
    # ---- partial last block and the fixed-point divmod (window 9, 468x468) -
    big_sparse = (468, 468, 1)
    big_window = (9, 9, 1)
    key, coords_b = _make_coords(key, [9973, 10027], big_sparse)   # N = 20000
    mapping_b = FlattenedWindowMapping(big_window, big_sparse, 69)
    out_b = mapping_b(coords_b, 2)
    jax.block_until_ready(out_b)
    ref_b = _mapping_ref_np(np.asarray(coords_b), 2, big_window, big_sparse, 69)
    for k in ("flat2win", "win2flat", "x", "y", "x_shift", "y_shift"):
        assert np.array_equal(np.asarray(out_b[k]), ref_b[k]), k

    print("KERNEL_OK")
</pallas_src>

<mosaic_0001>
module attributes {stable_mosaic.version = 11 : i64} {
  func.func @_vcode_kernel(%arg0: i32, %arg1: memref<3x1x1024xi32, #tpu.memory_space<vmem>>, %arg2: memref<4x1x1024xi32, #tpu.memory_space<vmem>>) attributes {dimension_semantics = [#tpu.dimension_semantics<parallel>], iteration_bounds = array<i64: 1>, scalar_prefetch = 0 : i64, scratch_operands = 0 : i64, tpu.core_type = #tpu.core_type<tc>, window_params = [{transform_indices = @transform_0, window_bounds = array<i64: 3, 1, 1024>}, {transform_indices = @transform_1, window_bounds = array<i64: 4, 1, 1024>}]} {
    %c0 = arith.constant 0 : index
    %c0_0 = arith.constant 0 : index
    %c0_1 = arith.constant 0 : index
    %0 = vector.load %arg1[%c0, %c0_0, %c0_1] : memref<3x1x1024xi32, #tpu.memory_space<vmem>>, vector<1x1x1024xi32>
    %1 = vector.shape_cast %0 : vector<1x1x1024xi32> to vector<1x1024xi32>
    %c1 = arith.constant 1 : index
    %c0_2 = arith.constant 0 : index
    %c0_3 = arith.constant 0 : index
    %2 = vector.load %arg1[%c1, %c0_2, %c0_3] : memref<3x1x1024xi32, #tpu.memory_space<vmem>>, vector<1x1x1024xi32>
    %3 = vector.shape_cast %2 : vector<1x1x1024xi32> to vector<1x1024xi32>
    %c2 = arith.constant 2 : index
    %c0_4 = arith.constant 0 : index
    %c0_5 = arith.constant 0 : index
    %4 = vector.load %arg1[%c2, %c0_4, %c0_5] : memref<3x1x1024xi32, #tpu.memory_space<vmem>>, vector<1x1x1024xi32>
    %5 = vector.shape_cast %4 : vector<1x1x1024xi32> to vector<1x1024xi32>
    %c2560_i32 = arith.constant 2560 : i32
    %6 = vector.broadcast %c2560_i32 : i32 to vector<1x1024xi32>
    %7 = arith.muli %1, %6 : vector<1x1024xi32>
    %c2_i32 = arith.constant 2 : i32
    %8 = vector.broadcast %c2_i32 : i32 to vector<1x1024xi32>
    %9 = arith.shrsi %5, %8 : vector<1x1024xi32>
    %c3_i32 = arith.constant 3 : i32
    %10 = vector.broadcast %c3_i32 : i32 to vector<1x1024xi32>
    %11 = arith.andi %5, %10 : vector<1x1024xi32>
    %c2_i32_6 = arith.constant 2 : i32
    %12 = vector.broadcast %c2_i32_6 : i32 to vector<1x1024xi32>
    %13 = arith.shrsi %3, %12 : vector<1x1024xi32>
    %c3_i32_7 = arith.constant 3 : i32
    %14 = vector.broadcast %c3_i32_7 : i32 to vector<1x1024xi32>
    %15 = arith.andi %3, %14 : vector<1x1024xi32>
    %c1_i32 = arith.constant 1 : i32
    %16 = vector.broadcast %c1_i32 : i32 to vector<1x1024xi32>
    %17 = arith.andi %13, %16 : vector<1x1024xi32>
    %c0_i32 = arith.constant 0 : i32
    %18 = vector.broadcast %c0_i32 : i32 to vector<1x1024xi32>
    %19 = arith.subi %18, %17 : vector<1x1024xi32>
    %c1_i32_8 = arith.constant 1 : i32
    %20 = vector.broadcast %c1_i32_8 : i32 to vector<1x1024xi32>
    %21 = arith.andi %9, %20 : vector<1x1024xi32>
    %c0_i32_9 = arith.constant 0 : i32
    %22 = vector.broadcast %c0_i32_9 : i32 to vector<1x1024xi32>
    %23 = arith.subi %22, %21 : vector<1x1024xi32>
    %c1_i32_10 = arith.constant 1 : i32
    %24 = vector.broadcast %c1_i32_10 : i32 to vector<1x1024xi32>
    %25 = arith.andi %11, %24 : vector<1x1024xi32>
    %c0_i32_11 = arith.constant 0 : i32
    %26 = vector.broadcast %c0_i32_11 : i32 to vector<1x1024xi32>
    %27 = arith.subi %26, %25 : vector<1x1024xi32>
    %c1_i32_12 = arith.constant 1 : i32
    %28 = vector.broadcast %c1_i32_12 : i32 to vector<1x1024xi32>
    %29 = arith.andi %15, %28 : vector<1x1024xi32>
    %c0_i32_13 = arith.constant 0 : i32
    %30 = vector.broadcast %c0_i32_13 : i32 to vector<1x1024xi32>
    %31 = arith.subi %30, %29 : vector<1x1024xi32>
    %c10_i32 = arith.constant 10 : i32
    %32 = vector.broadcast %c10_i32 : i32 to vector<1x1024xi32>
    %33 = arith.muli %32, %13 : vector<1x1024xi32>
    %34 = arith.xori %9, %19 : vector<1x1024xi32>
    %35 = arith.subi %34, %19 : vector<1x1024xi32>
    %36 = arith.addi %33, %35 : vector<1x1024xi32>
    %c64_i32 = arith.constant 64 : i32
    %37 = vector.broadcast %c64_i32 : i32 to vector<1x1024xi32>
    %38 = arith.muli %36, %37 : vector<1x1024xi32>
    %c8_i32 = arith.constant 8 : i32
    %39 = vector.broadcast %c8_i32 : i32 to vector<1x1024xi32>
    %40 = arith.muli %39, %11 : vector<1x1024xi32>
    %41 = arith.xori %15, %27 : vector<1x1024xi32>
    %42 = arith.subi %41, %27 : vector<1x1024xi32>
    %43 = arith.addi %40, %42 : vector<1x1024xi32>
    %44 = arith.xori %43, %19 : vector<1x1024xi32>
    %45 = arith.subi %44, %19 : vector<1x1024xi32>
    %46 = arith.addi %38, %45 : vector<1x1024xi32>
    %c10_i32_14 = arith.constant 10 : i32
    %47 = vector.broadcast %c10_i32_14 : i32 to vector<1x1024xi32>
    %48 = arith.muli %47, %9 : vector<1x1024xi32>
    %49 = arith.xori %13, %23 : vector<1x1024xi32>
    %50 = arith.subi %49, %23 : vector<1x1024xi32>
    %51 = arith.addi %48, %50 : vector<1x1024xi32>
    %c64_i32_15 = arith.constant 64 : i32
    %52 = vector.broadcast %c64_i32_15 : i32 to vector<1x1024xi32>
    %53 = arith.muli %51, %52 : vector<1x1024xi32>
    %c8_i32_16 = arith.constant 8 : i32
    %54 = vector.broadcast %c8_i32_16 : i32 to vector<1x1024xi32>
    %55 = arith.muli %54, %15 : vector<1x1024xi32>
    %56 = arith.xori %11, %31 : vector<1x1024xi32>
    %57 = arith.subi %56, %31 : vector<1x1024xi32>
    %58 = arith.addi %55, %57 : vector<1x1024xi32>
    %59 = arith.xori %58, %23 : vector<1x1024xi32>
    %60 = arith.subi %59, %23 : vector<1x1024xi32>
    %61 = arith.addi %53, %60 : vector<1x1024xi32>
    %62 = arith.addi %46, %7 : vector<1x1024xi32>
    %63 = arith.addi %61, %7 : vector<1x1024xi32>
    %c2_i32_17 = arith.constant 2 : i32
    %64 = vector.broadcast %c2_i32_17 : i32 to vector<1x1024xi32>
    %65 = arith.addi %5, %64 : vector<1x1024xi32>
    %c2_i32_18 = arith.constant 2 : i32
    %66 = vector.broadcast %c2_i32_18 : i32 to vector<1x1024xi32>
    %67 = arith.addi %3, %66 : vector<1x1024xi32>
    %c2_i32_19 = arith.constant 2 : i32
    %68 = vector.broadcast %c2_i32_19 : i32 to vector<1x1024xi32>
    %69 = arith.shrsi %65, %68 : vector<1x1024xi32>
    %c3_i32_20 = arith.constant 3 : i32
    %70 = vector.broadcast %c3_i32_20 : i32 to vector<1x1024xi32>
    %71 = arith.andi %65, %70 : vector<1x1024xi32>
    %c2_i32_21 = arith.constant 2 : i32
    %72 = vector.broadcast %c2_i32_21 : i32 to vector<1x1024xi32>
    %73 = arith.shrsi %67, %72 : vector<1x1024xi32>
    %c3_i32_22 = arith.constant 3 : i32
    %74 = vector.broadcast %c3_i32_22 : i32 to vector<1x1024xi32>
    %75 = arith.andi %67, %74 : vector<1x1024xi32>
    %c1_i32_23 = arith.constant 1 : i32
    %76 = vector.broadcast %c1_i32_23 : i32 to vector<1x1024xi32>
    %77 = arith.andi %73, %76 : vector<1x1024xi32>
    %c0_i32_24 = arith.constant 0 : i32
    %78 = vector.broadcast %c0_i32_24 : i32 to vector<1x1024xi32>
    %79 = arith.subi %78, %77 : vector<1x1024xi32>
    %c1_i32_25 = arith.constant 1 : i32
    %80 = vector.broadcast %c1_i32_25 : i32 to vector<1x1024xi32>
    %81 = arith.andi %69, %80 : vector<1x1024xi32>
    %c0_i32_26 = arith.constant 0 : i32
    %82 = vector.broadcast %c0_i32_26 : i32 to vector<1x1024xi32>
    %83 = arith.subi %82, %81 : vector<1x1024xi32>
    %c1_i32_27 = arith.constant 1 : i32
    %84 = vector.broadcast %c1_i32_27 : i32 to vector<1x1024xi32>
    %85 = arith.andi %71, %84 : vector<1x1024xi32>
    %c0_i32_28 = arith.constant 0 : i32
    %86 = vector.broadcast %c0_i32_28 : i32 to vector<1x1024xi32>
    %87 = arith.subi %86, %85 : vector<1x1024xi32>
    %c1_i32_29 = arith.constant 1 : i32
    %88 = vector.broadcast %c1_i32_29 : i32 to vector<1x1024xi32>
    %89 = arith.andi %75, %88 : vector<1x1024xi32>
    %c0_i32_30 = arith.constant 0 : i32
    %90 = vector.broadcast %c0_i32_30 : i32 to vector<1x1024xi32>
    %91 = arith.subi %90, %89 : vector<1x1024xi32>
    %c10_i32_31 = arith.constant 10 : i32
    %92 = vector.broadcast %c10_i32_31 : i32 to vector<1x1024xi32>
    %93 = arith.muli %92, %73 : vector<1x1024xi32>
    %94 = arith.xori %69, %79 : vector<1x1024xi32>
    %95 = arith.subi %94, %79 : vector<1x1024xi32>
    %96 = arith.addi %93, %95 : vector<1x1024xi32>
    %c64_i32_32 = arith.constant 64 : i32
    %97 = vector.broadcast %c64_i32_32 : i32 to vector<1x1024xi32>
    %98 = arith.muli %96, %97 : vector<1x1024xi32>
    %c8_i32_33 = arith.constant 8 : i32
    %99 = vector.broadcast %c8_i32_33 : i32 to vector<1x1024xi32>
    %100 = arith.muli %99, %71 : vector<1x1024xi32>
    %101 = arith.xori %75, %87 : vector<1x1024xi32>
    %102 = arith.subi %101, %87 : vector<1x1024xi32>
    %103 = arith.addi %100, %102 : vector<1x1024xi32>
    %104 = arith.xori %103, %79 : vector<1x1024xi32>
    %105 = arith.subi %104, %79 : vector<1x1024xi32>
    %106 = arith.addi %98, %105 : vector<1x1024xi32>
    %c10_i32_34 = arith.constant 10 : i32
    %107 = vector.broadcast %c10_i32_34 : i32 to vector<1x1024xi32>
    %108 = arith.muli %107, %69 : vector<1x1024xi32>
    %109 = arith.xori %73, %83 : vector<1x1024xi32>
    %110 = arith.subi %109, %83 : vector<1x1024xi32>
    %111 = arith.addi %108, %110 : vector<1x1024xi32>
    %c64_i32_35 = arith.constant 64 : i32
    %112 = vector.broadcast %c64_i32_35 : i32 to vector<1x1024xi32>
    %113 = arith.muli %111, %112 : vector<1x1024xi32>
    %c8_i32_36 = arith.constant 8 : i32
    %114 = vector.broadcast %c8_i32_36 : i32 to vector<1x1024xi32>
    %115 = arith.muli %114, %75 : vector<1x1024xi32>
    %116 = arith.xori %71, %91 : vector<1x1024xi32>
    %117 = arith.subi %116, %91 : vector<1x1024xi32>
    %118 = arith.addi %115, %117 : vector<1x1024xi32>
    %119 = arith.xori %118, %83 : vector<1x1024xi32>
    %120 = arith.subi %119, %83 : vector<1x1024xi32>
    %121 = arith.addi %113, %120 : vector<1x1024xi32>
    %122 = arith.addi %106, %7 : vector<1x1024xi32>
    %123 = arith.addi %121, %7 : vector<1x1024xi32>
    %c0_37 = arith.constant 0 : index
    %c0_38 = arith.constant 0 : index
    %c0_39 = arith.constant 0 : index
    %124 = vector.load %arg2[%c0_37, %c0_38, %c0_39] : memref<4x1x1024xi32, #tpu.memory_space<vmem>>, vector<1x1x1024xi32>
    %125 = vector.shape_cast %124 : vector<1x1x1024xi32> to vector<1x1024xi32>
    %126 = vector.shape_cast %62 : vector<1x1024xi32> to vector<1x1x1024xi32>
    tpu.vector_store %arg2[%c0_37, %c0_38, %c0_39], %126 {strides = array<i32>} : memref<4x1x1024xi32, #tpu.memory_space<vmem>>, vector<1x1x1024xi32>,
    %c1_40 = arith.constant 1 : index
    %c0_41 = arith.constant 0 : index
    %c0_42 = arith.constant 0 : index
    %127 = vector.load %arg2[%c1_40, %c0_41, %c0_42] : memref<4x1x1024xi32, #tpu.memory_space<vmem>>, vector<1x1x1024xi32>
    %128 = vector.shape_cast %127 : vector<1x1x1024xi32> to vector<1x1024xi32>
    %129 = vector.shape_cast %63 : vector<1x1024xi32> to vector<1x1x1024xi32>
    tpu.vector_store %arg2[%c1_40, %c0_41, %c0_42], %129 {strides = array<i32>} : memref<4x1x1024xi32, #tpu.memory_space<vmem>>, vector<1x1x1024xi32>,
    %c2_43 = arith.constant 2 : index
    %c0_44 = arith.constant 0 : index
    %c0_45 = arith.constant 0 : index
    %130 = vector.load %arg2[%c2_43, %c0_44, %c0_45] : memref<4x1x1024xi32, #tpu.memory_space<vmem>>, vector<1x1x1024xi32>
    %131 = vector.shape_cast %130 : vector<1x1x1024xi32> to vector<1x1024xi32>
    %132 = vector.shape_cast %122 : vector<1x1024xi32> to vector<1x1x1024xi32>
    tpu.vector_store %arg2[%c2_43, %c0_44, %c0_45], %132 {strides = array<i32>} : memref<4x1x1024xi32, #tpu.memory_space<vmem>>, vector<1x1x1024xi32>,
    %c3 = arith.constant 3 : index
    %c0_46 = arith.constant 0 : index
    %c0_47 = arith.constant 0 : index
    %133 = vector.load %arg2[%c3, %c0_46, %c0_47] : memref<4x1x1024xi32, #tpu.memory_space<vmem>>, vector<1x1x1024xi32>
    %134 = vector.shape_cast %133 : vector<1x1x1024xi32> to vector<1x1024xi32>
    %135 = vector.shape_cast %123 : vector<1x1024xi32> to vector<1x1x1024xi32>
    tpu.vector_store %arg2[%c3, %c0_46, %c0_47], %135 {strides = array<i32>} : memref<4x1x1024xi32, #tpu.memory_space<vmem>>, vector<1x1x1024xi32>,
    return
  }
  func.func @transform_0(%arg0: i32) -> (i32, i32, i32) {
    %c0_i32 = arith.constant 0 : i32
    %c0_i32_0 = arith.constant 0 : i32
    %c0_i32_1 = arith.constant 0 : i32
    return %c0_i32, %arg0, %c0_i32_0 : i32, i32, i32
  }
  func.func @transform_1(%arg0: i32) -> (i32, i32, i32) {
    %c0_i32 = arith.constant 0 : i32
    %c0_i32_0 = arith.constant 0 : i32
    %c0_i32_1 = arith.constant 0 : i32
    return %c0_i32, %arg0, %c0_i32_0 : i32, i32, i32
  }
}

</mosaic_0001>

<bundles_post_ra>
// kernel: tpu_custom_call.1
= control target key start
LH: loop header
LB: loop body
LE: loop exit
PB: predicated region body
PF: predicated region fallthrough
CT: control target
= control target key end

     0   :  { %6 = vsyncpa [#allocation3], 0  ;;  %s233_s0 = inlined_call_operand.hbm [shape: s32[3,1,1024], index: 0, kind: input, shape index: {}]   ;;  %s234_s1 = inlined_call_operand.hbm [shape: s32[4,1,1024], index: 1, kind: output, shape index: {}]  }
   0x1   :  { %7 = vsyncpa [#allocation4], 0  ;;  %s183_s6 = smov [#allocation2]   ;;  %s135_s10 = scalar_lea.hbm %s233_s0, 384 }
   0x2   :  { %s13_s7 = sshll.u32 %s183_s6, 4  ;;  %p136_p0 = scmp.ne.s32.totalorder %s233_s0, %s135_s10  ;;  %s14_s7 = int_to_ptr.vmem [resolvable:$true] %s13_s7 }
   0x3   :  { %p139_p1 = scmp.lt.u32.totalorder %s135_s10, %s233_s0 }
   0x5   :  { %p141_p2 = pnand %p139_p1, %p136_p0 }
   0x7   :  { %144 = shalt.err (!%p141_p2)
}
   0x8   :  { %s145_s15 = scalar_lea.vmem %s14_s7, 384  ;;  %p150_p4 = scmp.lt.s32.totalorder %s14_s7, %s14_s7 }
   0x9   :  { %p146_p3 = scmp.ne.s32.totalorder %s14_s7, %s145_s15  ;;  %p151_p5 = scmp.lt.s32.totalorder %s145_s15, %s145_s15 }
   0xb   :  { %p152_p6 = por %p151_p5, %p150_p4 }
   0xd   :  { %p153_p7 = pnand %p152_p6, %p146_p3 }
   0xf   :  { %156 = shalt.err (!%p153_p7)
}
  0x10   :  { %s184_s16 = smov 128   ;;  %s185_s17 = smov 8  }
  0x11   :  { %19 = dma.hbm_to_vmem [thread:$0]  %s233_s0, 384, %s14_s7, [#allocation3], %s184_s16, %s184_s16, %s185_s17  }
  0x12   :  { %179 = dma.done.wait [#allocation3], 384  }
  0x13   :  { %180 = vsyncadd [#allocation3], 4294966912  ;;  %v23_v0 = vld [vmem:[#allocation2] sm:$0xff]  ;;  %v25_v1 = vld [vmem:[#allocation2 + $0x8] sm:$0xff]  ;;  %s186_s0 = smov [#allocation5]  }
  0x14   :  { %v27_v2 = vld [vmem:[#allocation2 + $0x10] sm:$0xff]  ;;  %v31_v5 = vshra.s32 %v25_v1, 2  ;;  %v212_v6 = vmul.u32 2560, %v23_v0  ;;  %v32_v7 = vand.u32 3, %v25_v1  ;;  %v68_v9 = vadd.s32 2, %v25_v1  ;;  %s119_s20 = sshll.u32 %s186_s0, 4  ;;  %s120_s20 = int_to_ptr.vmem [resolvable:$true] %s119_s20 }
  0x15   :  { %v29_v3 = vshra.s32 %v27_v2, 2  ;;  %v30_v4 = vand.u32 3, %v27_v2  ;;  %v67_v8 = vadd.s32 2, %v27_v2  ;;  %s157_s21 = scalar_lea.vmem %s120_s20, 512  ;;  %p162_p9 = scmp.lt.s32.totalorder %s120_s20, %s120_s20 }
  0x16   :  { %v33_v10 = vand.u32 1, %v31_v5  ;;  %v41_v12 = vmul.u32 10, %v31_v5  ;;  %v39_v15 = vand.u32 1, %v32_v7  ;;  %v58_v17 = vmul.u32 8, %v32_v7  ;;  %p158_p8 = scmp.ne.s32.totalorder %s120_s20, %s157_s21  ;;  %p163_p10 = scmp.lt.s32.totalorder %s157_s21, %s157_s21 }
  0x17   :  { %v37_v11 = vand.u32 1, %v30_v4  ;;  %v46_v13 = vmul.u32 8, %v30_v4  ;;  %v35_v14 = vand.u32 1, %v29_v3  ;;  %v53_v16 = vmul.u32 10, %v29_v3 }
  0x18   :  { %v34_v18 = vsub.s32 0, %v33_v10  ;;  %v69_v20 = vshra.s32 %v67_v8, 2  ;;  %v70_v21 = vand.u32 3, %v67_v8  ;;  %v40_v23 = vsub.s32 0, %v39_v15  ;;  %p164_p11 = por %p163_p10, %p162_p9 }
  0x19   :  { %v38_v19 = vsub.s32 0, %v37_v11  ;;  %v36_v22 = vsub.s32 0, %v35_v14  ;;  %v71_v24 = vshra.s32 %v68_v9, 2  ;;  %v72_v25 = vand.u32 3, %v68_v9 }
  0x1a   :  { %v42_v26 = vxor.u32 %v34_v18, %v29_v3  ;;  %v77_v28 = vand.u32 1, %v70_v21  ;;  %v86_v29 = vmul.u32 8, %v70_v21  ;;  %v59_v31 = vxor.u32 %v40_v23, %v30_v4  ;;  %p165_p12 = pnand %p164_p11, %p158_p8 }
  0x1b   :  { %v47_v27 = vxor.u32 %v38_v19, %v32_v7  ;;  %v54_v30 = vxor.u32 %v36_v22, %v31_v5  ;;  %v73_v32 = vand.u32 1, %v71_v24  ;;  %v81_v33 = vmul.u32 10, %v71_v24 }
  0x1c   :  { %v43_v34 = vsub.s32 %v42_v26, %v34_v18  ;;  %v78_v36 = vsub.s32 0, %v77_v28  ;;  %v75_v37 = vand.u32 1, %v69_v20  ;;  %v60_v39 = vsub.s32 %v59_v31, %v40_v23 }
  0x1d   :  { %v48_v35 = vsub.s32 %v47_v27, %v38_v19  ;;  %v55_v38 = vsub.s32 %v54_v30, %v36_v22  ;;  %v74_v40 = vsub.s32 0, %v73_v32  ;;  %v79_v41 = vand.u32 1, %v72_v25 }
  0x1e   :  { %v44_v42 = vadd.s32 %v43_v34, %v41_v12  ;;  %v87_v44 = vxor.u32 %v78_v36, %v72_v25  ;;  %v76_v45 = vsub.s32 0, %v75_v37  ;;  %v61_v47 = vadd.s32 %v60_v39, %v58_v17 }
  0x1f   :  { %v49_v43 = vadd.s32 %v48_v35, %v46_v13  ;;  %v56_v46 = vadd.s32 %v55_v38, %v53_v16  ;;  %v82_v48 = vxor.u32 %v74_v40, %v69_v20  ;;  %v80_v49 = vsub.s32 0, %v79_v41 }
  0x20   :  { %v45_v50 = vmul.u32 64, %v44_v42  ;;  %v88_v52 = vsub.s32 %v87_v44, %v78_v36  ;;  %v93_v53 = vmul.u32 10, %v69_v20  ;;  %v62_v55 = vxor.u32 %v61_v47, %v36_v22 }
  0x21   :  { %v50_v51 = vxor.u32 %v49_v43, %v34_v18  ;;  %v57_v54 = vmul.u32 64, %v56_v46  ;;  %v83_v56 = vsub.s32 %v82_v48, %v74_v40  ;;  %v94_v57 = vxor.u32 %v76_v45, %v71_v24 }
  0x22   :  { %v89_v59 = vadd.s32 %v88_v52, %v86_v29  ;;  %v98_v60 = vmul.u32 8, %v72_v25  ;;  %v99_v61 = vxor.u32 %v80_v49, %v70_v21  ;;  %v63_v62 = vsub.s32 %v62_v55, %v36_v22 }
  0x23   :  { %v51_v58 = vsub.s32 %v50_v51, %v34_v18  ;;  %v84_v63 = vadd.s32 %v83_v56, %v81_v33  ;;  %v95_v0 = vsub.s32 %v94_v57, %v76_v45 }
  0x24   :  { %v90_v2 = vxor.u32 %v89_v59, %v74_v40  ;;  %v100_v3 = vsub.s32 %v99_v61, %v80_v49  ;;  %v64_v4 = vadd.s32 %v63_v62, %v57_v54 }
  0x25   :  { %v52_v1 = vadd.s32 %v51_v58, %v45_v50  ;;  %v85_v5 = vmul.u32 64, %v84_v63  ;;  %v96_v7 = vadd.s32 %v95_v0, %v93_v53 }
  0x26   :  { %v91_v9 = vsub.s32 %v90_v2, %v74_v40  ;;  %v101_v10 = vadd.s32 %v100_v3, %v98_v60  ;;  %v66_v11 = vadd.s32 %v64_v4, %v212_v6 }
  0x27   :  { %v65_v8 = vadd.s32 %v52_v1, %v212_v6  ;;  %v97_v13 = vmul.u32 64, %v96_v7 }
  0x28   :  { %v92_v12 = vadd.s32 %v91_v9, %v85_v5  ;;  %v102_v14 = vxor.u32 %v101_v10, %v76_v45  ;;  %109 = vst [vmem:[#allocation5 + $0x8] sm:$0xff] %v66_v11 }
  0x29   :  { %107 = vst [vmem:[#allocation5] sm:$0xff] %v65_v8 }
  0x2a   :  { %v105_v15 = vadd.s32 %v92_v12, %v212_v6  ;;  %v103_v16 = vsub.s32 %v102_v14, %v76_v45 }
  0x2c   :  { %111 = vst [vmem:[#allocation5 + $0x10] sm:$0xff] %v105_v15  ;;  %v104_v17 = vadd.s32 %v103_v16, %v97_v13 }
  0x2e   :  { %v106_v18 = vadd.s32 %v104_v17, %v212_v6 }
  0x30   :  { %113 = vst [vmem:[#allocation5 + $0x18] sm:$0xff] %v106_v18 }
  0x31   :  { %168 = shalt.err (!%p165_p12)
}
  0x32   :  { %s169_s24 = scalar_lea.hbm %s234_s1, 512 }
  0x33   :  { %p170_p13 = scmp.ne.s32.totalorder %s234_s1, %s169_s24  ;;  %p173_p0 = scmp.lt.u32.totalorder %s169_s24, %s234_s1 }
  0x35   :  { %p175_p1 = pnand %p173_p0, %p170_p13 }
  0x37   :  { %178 = shalt.err (!%p175_p1)
}
  0x38   :  { %125 = dma.vmem_to_hbm [thread:$0]  %s120_s20, 512, %s234_s1, [#allocation4], %s184_s16, %s184_s16, %s185_s17  }
  0x39   :  { %181 = dma.done.wait [#allocation4], 512  }
  0x3a   :  { %182 = vsyncadd [#allocation4], 4294966784 }
  0x3b   :  { %129 = vsyncpa [#allocation3], 1 }
  0x3c   :  { %130 = vsyncpa [#allocation4], 1 }

</bundles_post_ra>
